<compile_context>
chip_gen: v7x
topology: tpu7x:2x2x1
jax: 0.10.0
libtpu: 0.0.40
codegen_flags: <defaults>
</compile_context>

<pallas_src>
import functools

import jax
import jax.numpy as jnp
from jax.experimental import pallas as pl
from jax.experimental.pallas import tpu as pltpu


# ----------------------------------------------------------------------------
# Pallas kernel: grouped 1-D conv (polyphase taps, K accumulating dots or VPU
# FMAs) + bias (+ fused leaky_relu).  Processes g_chunk groups per grid step.
# ----------------------------------------------------------------------------
def _gconv1d_kernel(x_ref, w_ref, b_ref, o_ref, *, K, cin_g, stride, dilation,
                    g_chunk, l_tile, n_l_tiles, lrelu_slope):
    # x_ref: (g_chunk*stride, cin_g, Lphase)   phase p of group g is row g*stride+p
    # w_ref: (g_chunk*K, cout_g, cin_g)        tap k of group g is row g*K+k
    # b_ref: (g_chunk, cout_g, 1)              f32 bias
    # o_ref: (g_chunk, cout_g, l_tile)         output tile
    if n_l_tiles == 1:
        base = 0                                             # fully static path
    else:
        base = pl.multiple_of(pl.program_id(2) * l_tile, 128)

    for g in range(g_chunk):                  # static unroll over group chunk
        acc = jnp.zeros(o_ref.shape[1:], jnp.float32)
        for k in range(K):                    # static unroll over kernel taps
            p = (k * dilation) % stride       # phase of this tap
            o = (k * dilation) // stride      # lane offset within the phase
            tap = x_ref[g * stride + p, :, pl.ds(base + o, l_tile)]
            if cin_g == 1:
                # VPU path: broadcast FMA (avoids a <1%-fill MXU matmul).
                wk = w_ref[g * K + k].astype(jnp.float32)       # (cout_g, 1)
                acc = acc + wk * tap.astype(jnp.float32)
            else:
                # MXU path: shallow dot per tap, f32 accumulation.
                acc = acc + jnp.dot(w_ref[g * K + k], tap,
                                    preferred_element_type=jnp.float32)
        acc = acc + b_ref[g]
        if lrelu_slope is not None:
            acc = jnp.where(acc >= 0, acc, acc * lrelu_slope)
        o_ref[g] = acc.astype(o_ref.dtype)


def _choose_l_tile(lout_pad, target=2048):
    """Largest multiple of 128 dividing lout_pad (itself a multiple of 128)
    that is <= target (target can be raised on v5e/v6e's 128 MiB VMEM)."""
    assert lout_pad % 128 == 0
    t = max(128, min(lout_pad, (target // 128) * 128))
    while lout_pad % t != 0:
        t -= 128
    return t


def _choose_g_chunk(groups, cap=8):
    """Largest divisor of `groups` that is <= cap (amortizes grid-step
    overhead for the high-group, tiny-Cout_g layers)."""
    if groups <= 1:
        return 1
    gc = 1
    for d in range(1, min(groups, cap) + 1):
        if groups % d == 0:
            gc = d
    return gc


# ----------------------------------------------------------------------------
# Parameter preparation (weight re-layout done ONCE, at construction time)
# ----------------------------------------------------------------------------
def prep_conv_params(w, b, *, stride=1, dilation=1, groups=1, padding=0,
                     lrelu_slope=None):
    cout, cin_g, K = w.shape
    assert cout % groups == 0
    cout_g = cout // groups
    # (Cout, Cin_g, K) -> (G*K, Cout_g, Cin_g): row index = group*K + tap
    wg = (w.reshape(groups, cout_g, cin_g, K)
            .transpose(0, 3, 1, 2)
            .reshape(groups * K, cout_g, cin_g)
            .astype(jnp.bfloat16))
    bg = b.reshape(groups, cout_g, 1).astype(jnp.float32)
    return dict(w=wg, b=bg, K=K, cin_g=cin_g, cout_g=cout_g, groups=groups,
                stride=stride, dilation=dilation, padding=padding,
                lrelu_slope=lrelu_slope)


# ----------------------------------------------------------------------------
# Wrapper: polyphase input prep + pallas_call
# ----------------------------------------------------------------------------
def conv1d_pallas(p, x, out_dtype=jnp.bfloat16, l_tile_target=2048):
    """Grouped F.conv1d(x, w, b, stride, padding, dilation, groups), optionally
    fused with F.leaky_relu(., slope).  bf16 data, f32 accumulation."""
    B, Cin, Lin = x.shape
    G, K = p["groups"], p["K"]
    cin_g, cout_g = p["cin_g"], p["cout_g"]
    stride, dilation, padding = p["stride"], p["dilation"], p["padding"]
    assert Cin == G * cin_g

    Lout = (Lin + 2 * padding - dilation * (K - 1) - 1) // stride + 1
    assert Lout > 0
    Lout_pad = ((Lout + 127) // 128) * 128            # lane-dense output tiles
    l_tile = _choose_l_tile(Lout_pad, l_tile_target)
    n_lt = Lout_pad // l_tile

    # Padded input length covering every tap of every (padded) output position,
    # rounded up to a multiple of stride for the polyphase reshape.
    Lp_need = (Lout_pad - 1) * stride + dilation * (K - 1) + 1
    Lp_total = max(Lin + 2 * padding, Lp_need)
    Lp_total = ((Lp_total + stride - 1) // stride) * stride
    right_pad = Lp_total - Lin - padding
    Lphase = Lp_total // stride

    xg = x.astype(jnp.bfloat16).reshape(B, G, cin_g, Lin)
    xg = jnp.pad(xg, ((0, 0), (0, 0), (0, 0), (padding, right_pad)))
    # Polyphase deinterleave: row (g*stride + ph) holds x[g, :, ph::stride].
    xg = (xg.reshape(B, G, cin_g, Lphase, stride)
            .transpose(0, 1, 4, 2, 3)
            .reshape(B, G * stride, cin_g, Lphase))

    g_chunk = _choose_g_chunk(G)
    n_gc = G // g_chunk

    kernel = functools.partial(
        _gconv1d_kernel, K=K, cin_g=cin_g, stride=stride, dilation=dilation,
        g_chunk=g_chunk, l_tile=l_tile, n_l_tiles=n_lt,
        lrelu_slope=p["lrelu_slope"])

    out_bytes = jnp.dtype(out_dtype).itemsize
    blk_bytes = (g_chunk * stride * cin_g * Lphase * 2
                 + g_chunk * K * cout_g * cin_g * 2
                 + g_chunk * cout_g * 4
                 + g_chunk * cout_g * l_tile * out_bytes)
    vmem_limit = int(min(96 * 2 ** 20, max(32 * 2 ** 20, 3 * blk_bytes)))

    out = pl.pallas_call(
        kernel,
        out_shape=jax.ShapeDtypeStruct((B, G, cout_g, Lout_pad), out_dtype),
        grid_spec=pltpu.PrefetchScalarGridSpec(
            num_scalar_prefetch=0,
            grid=(B, n_gc, n_lt),
            in_specs=[
                # Full polyphase input per (batch, group-chunk): constant block
                # index along the L-tile axis, so it stays VMEM-resident.
                pl.BlockSpec((None, g_chunk * stride, cin_g, Lphase),
                             lambda bi, gi, li: (bi, gi, 0, 0)),
                # Weights/bias depend only on the group-chunk axis (tiny).
                pl.BlockSpec((g_chunk * K, cout_g, cin_g),
                             lambda bi, gi, li: (gi, 0, 0)),
                pl.BlockSpec((g_chunk, cout_g, 1),
                             lambda bi, gi, li: (gi, 0, 0)),
            ],
            out_specs=pl.BlockSpec((None, g_chunk, cout_g, l_tile),
                                   lambda bi, gi, li: (bi, gi, 0, li)),
        ),
        compiler_params=pltpu.CompilerParams(
            dimension_semantics=("parallel", "parallel", "parallel"),
            vmem_limit_bytes=vmem_limit),
    )(xg, p["w"], p["b"])

    out = out.reshape(B, G * cout_g, Lout_pad)
    if Lout_pad != Lout:
        out = out[:, :, :Lout]
    return out


# ----------------------------------------------------------------------------
# Parameter construction (deterministic, PyTorch Conv1d default-style init)
# ----------------------------------------------------------------------------
def init_conv_params(key, cout, cin_g, k):
    wkey, bkey = jax.random.split(key)
    bound = 1.0 / ((cin_g * k) ** 0.5)
    w = jax.random.uniform(wkey, (cout, cin_g, k), jnp.float32, -bound, bound)
    b = jax.random.uniform(bkey, (cout,), jnp.float32, -bound, bound)
    return w, b


def make_combd_block(key, h_u, d_k, d_s, d_d, d_g, d_p, op_f, op_k, op_g):
    filters = [[1, h_u[0]]] + [[h_u[i], h_u[i + 1]] for i in range(len(h_u) - 1)]
    convs = []
    for (cin, cout), k, s, d, g, pd in zip(filters, d_k, d_s, d_d, d_g, d_p):
        key, sub = jax.random.split(key)
        w, b = init_conv_params(sub, cout, cin // g, k)
        convs.append(prep_conv_params(w, b, stride=s, dilation=d, groups=g,
                                      padding=pd, lrelu_slope=0.2))
    key, sub = jax.random.split(key)
    pw, pb = init_conv_params(sub, op_f, filters[-1][1] // op_g, op_k)
    proj = prep_conv_params(pw, pb, stride=1, dilation=1, groups=op_g,
                            padding=0, lrelu_slope=None)
    return dict(convs=convs, proj=proj)


def combd_block_forward(params, x):
    fmap = []
    for c in params["convs"]:
        x = conv1d_pallas(c, x)               # leaky_relu(0.2) fused in-kernel
        fmap.append(x)
    x = conv1d_pallas(params["proj"], x, out_dtype=jnp.float32)
    return x, fmap


# ----------------------------------------------------------------------------
# PQMF analysis (cosine-modulated filter bank; conv routed through the kernel)
# ----------------------------------------------------------------------------
def make_pqmf_analysis_filter(subbands, taps=33):
    n = jnp.arange(taps, dtype=jnp.float32)
    m = n - (taps - 1) / 2.0
    m_safe = jnp.where(m == 0, 1.0, m)
    cutoff = 0.5 / subbands
    sinc = jnp.where(m == 0, 2.0 * cutoff,
                     jnp.sin(2.0 * jnp.pi * cutoff * m_safe) / (jnp.pi * m_safe))
    window = 0.5 - 0.5 * jnp.cos(2.0 * jnp.pi * n / (taps - 1))
    h_proto = sinc * window
    ks = jnp.arange(subbands, dtype=jnp.float32)[:, None]
    sign = jnp.where(jnp.arange(subbands)[:, None] % 2 == 0, 1.0, -1.0)
    phase = (2.0 * ks + 1.0) * (jnp.pi / (2.0 * subbands)) * m[None, :] \
        + sign * (jnp.pi / 4.0)
    h_analysis = 2.0 * h_proto[None, :] * jnp.cos(phase)   # (subbands, taps)
    return h_analysis.reshape(subbands, 1, taps)


def make_pqmf_first_band_params(subbands, taps=33):
    # CoMBD only consumes analysis(x)[:, :1, :], so only the first sub-band
    # filter is built (bit-identical to slicing the full analysis output).
    filt = make_pqmf_analysis_filter(subbands, taps)
    pad = (taps - 1) // 2
    return prep_conv_params(filt[:1], jnp.zeros((1,), jnp.float32),
                            stride=subbands, dilation=1, groups=1,
                            padding=pad, lrelu_slope=None)


# ----------------------------------------------------------------------------
# CoMBD forward (real + fake + multi-scale batched through shared blocks)
# ----------------------------------------------------------------------------
def _run_block_batched(block, xs):
    n = len(xs)
    bsz = xs[0].shape[0]
    x = jnp.concatenate([xi.astype(jnp.bfloat16) for xi in xs], axis=0)
    o, fl = combd_block_forward(block, x)
    outs = [o[j * bsz:(j + 1) * bsz] for j in range(n)]
    fmaps = [[f[j * bsz:(j + 1) * bsz] for f in fl] for j in range(n)]
    return outs, fmaps


def combd_forward(blocks, pqmf_banks, ys, ys_hat):
    nb = len(blocks)
    B = ys[-1].shape[0]

    # PQMF multi-scale inputs: real and fake share the bank -> one call each.
    full = jnp.concatenate([ys[-1], ys_hat[-1]], axis=0)
    msi, msi_hat = [], []
    for bank in pqmf_banks:
        a = conv1d_pallas(bank, full, out_dtype=jnp.bfloat16)
        msi.append(a[:B])
        msi_hat.append(a[B:])

    n_out = 2 * nb - 1
    outs_real = [None] * n_out
    outs_fake = [None] * n_out
    f_maps_real = [None] * n_out
    f_maps_fake = [None] * n_out

    for i, blk in enumerate(blocks):
        if i < nb - 1 and ys[i].shape == msi[i].shape:
            (o_r, o_mr, o_f, o_mf), (fm_r, fm_mr, fm_f, fm_mf) = \
                _run_block_batched(blk, [ys[i], msi[i], ys_hat[i], msi_hat[i]])
            outs_real[i], outs_real[nb + i] = o_r, o_mr
            outs_fake[i], outs_fake[nb + i] = o_f, o_mf
            f_maps_real[i], f_maps_real[nb + i] = fm_r, fm_mr
            f_maps_fake[i], f_maps_fake[nb + i] = fm_f, fm_mf
        elif i < nb - 1:
            (o_r, o_f), (fm_r, fm_f) = _run_block_batched(blk, [ys[i], ys_hat[i]])
            (o_mr, o_mf), (fm_mr, fm_mf) = _run_block_batched(
                blk, [msi[i], msi_hat[i]])
            outs_real[i], outs_real[nb + i] = o_r, o_mr
            outs_fake[i], outs_fake[nb + i] = o_f, o_mf
            f_maps_real[i], f_maps_real[nb + i] = fm_r, fm_mr
            f_maps_fake[i], f_maps_fake[nb + i] = fm_f, fm_mf
        else:
            (o_r, o_f), (fm_r, fm_f) = _run_block_batched(blk, [ys[i], ys_hat[i]])
            outs_real[i], outs_fake[i] = o_r, o_f
            f_maps_real[i], f_maps_fake[i] = fm_r, fm_f

    return outs_real, outs_fake, f_maps_real, f_maps_fake


# ----------------------------------------------------------------------------
# Correctness self-check of the conv kernel against lax.conv_general_dilated
# ----------------------------------------------------------------------------
def _check_conv(key, *, B, cin, L, cout, K, stride, dilation, groups, padding,
                lrelu):
    cin_g = cin // groups
    k1, k2, k3 = jax.random.split(key, 3)
    x = jax.random.normal(k1, (B, cin, L), jnp.float32)
    bound = 1.0 / ((cin_g * K) ** 0.5)
    w = jax.random.uniform(k2, (cout, cin_g, K), jnp.float32, -bound, bound)
    b = jax.random.uniform(k3, (cout,), jnp.float32, -bound, bound)
    p = prep_conv_params(w, b, stride=stride, dilation=dilation, groups=groups,
                         padding=padding, lrelu_slope=lrelu)
    y = conv1d_pallas(p, x, out_dtype=jnp.float32)
    xb = x.astype(jnp.bfloat16).astype(jnp.float32)
    wb = w.astype(jnp.bfloat16).astype(jnp.float32)
    ref = jax.lax.conv_general_dilated(
        xb, wb, (stride,), [(padding, padding)], rhs_dilation=(dilation,),
        feature_group_count=groups,
        dimension_numbers=("NCH", "OIH", "NCH")) + b[None, :, None]
    if lrelu is not None:
        ref = jnp.where(ref >= 0, ref, ref * lrelu)
    err = float(jnp.max(jnp.abs(y - ref)))
    assert err < 5e-2, f"conv1d_pallas mismatch vs lax reference: {err}"


# ----------------------------------------------------------------------------
if __name__ == "__main__":
    # Kernel unit checks (cin_g==1 VPU path, grouped stride-4 polyphase path,
    # dilated MXU path).
    _check_conv(jax.random.PRNGKey(1), B=2, cin=1, L=150, cout=8, K=7,
                stride=1, dilation=1, groups=1, padding=3, lrelu=0.2)
    _check_conv(jax.random.PRNGKey(2), B=2, cin=16, L=200, cout=32, K=5,
                stride=4, dilation=1, groups=4, padding=2, lrelu=0.2)
    _check_conv(jax.random.PRNGKey(3), B=1, cin=8, L=160, cout=8, K=3,
                stride=1, dilation=2, groups=1, padding=2, lrelu=None)

    key = jax.random.PRNGKey(0)
    B, L = 2, 128  # full-rate signal length; lv1 = L/2, lv2 = L/4

    # Small synthetic hyperparameters (same structure as h.combd_* in the model)
    combd_h_u = [[8, 16], [8, 16], [8, 16]]
    combd_d_k = [[5, 5], [5, 5], [5, 5]]
    combd_d_s = [[1, 2], [1, 2], [1, 2]]
    combd_d_d = [[1, 1], [1, 1], [1, 1]]
    combd_d_g = [[1, 2], [1, 2], [1, 2]]
    combd_d_p = [[2, 2], [2, 2], [2, 2]]
    combd_op_f = [1, 1, 1]
    combd_op_k = [3, 3, 3]
    combd_op_g = [1, 1, 1]

    keys = jax.random.split(key, 10)
    blocks = []
    for i in range(3):
        blocks.append(
            make_combd_block(
                keys[i], combd_h_u[i], combd_d_k[i], combd_d_s[i],
                combd_d_d[i], combd_d_g[i], combd_d_p[i],
                combd_op_f[i], combd_op_k[i], combd_op_g[i]))

    # pqmf_config: lv2 -> 4 subbands, lv1 -> 2 subbands
    pqmf_banks = [make_pqmf_first_band_params(4), make_pqmf_first_band_params(2)]

    ys = [
        jax.random.normal(keys[3], (B, 1, L // 4), jnp.float32),
        jax.random.normal(keys[4], (B, 1, L // 2), jnp.float32),
        jax.random.normal(keys[5], (B, 1, L), jnp.float32),
    ]
    ys_hat = [
        jax.random.normal(keys[6], (B, 1, L // 4), jnp.float32),
        jax.random.normal(keys[7], (B, 1, L // 2), jnp.float32),
        jax.random.normal(keys[8], (B, 1, L), jnp.float32),
    ]

    outs_real, outs_fake, f_maps_real, f_maps_fake = combd_forward(
        blocks, pqmf_banks, ys, ys_hat)

    jax.block_until_ready(outs_real)
    jax.block_until_ready(outs_fake)
    jax.block_until_ready(f_maps_real)
    jax.block_until_ready(f_maps_fake)
    print("KERNEL_OK")
</pallas_src>

<mosaic_0001>
module attributes {stable_mosaic.version = 11 : i64} {
  func.func @_gconv1d_kernel(%arg0: i32, %arg1: i32, %arg2: i32, %arg3: memref<1x1x1x262xbf16, #tpu.memory_space<vmem>>, %arg4: memref<7x8x1xbf16, #tpu.memory_space<vmem>>, %arg5: memref<1x8x1xf32, #tpu.memory_space<vmem>>, %arg6: memref<1x1x8x256xf32, #tpu.memory_space<vmem>>) attributes {dimension_semantics = [#tpu.dimension_semantics<parallel>, #tpu.dimension_semantics<parallel>, #tpu.dimension_semantics<parallel>], iteration_bounds = array<i64: 2, 1, 1>, scalar_prefetch = 0 : i64, scratch_operands = 0 : i64, tpu.core_type = #tpu.core_type<tc>, window_params = [{transform_indices = @transform_0, window_bounds = array<i64: 1, 1, 1, 262>}, {transform_indices = @transform_1, window_bounds = array<i64: 7, 8, 1>}, {transform_indices = @transform_2, window_bounds = array<i64: 1, 8, 1>}, {transform_indices = @transform_3, window_bounds = array<i64: 1, 1, 8, 256>}]} {
    %cst = arith.constant 0.000000e+00 : f32
    %0 = vector.broadcast %cst : f32 to vector<8x256xf32>
    %c0 = arith.constant 0 : index
    %c0_0 = arith.constant 0 : index
    %c0_1 = arith.constant 0 : index
    %c0_2 = arith.constant 0 : index
    %1 = vector.load %arg3[%c0, %c0_0, %c0_1, %c0_2] : memref<1x1x1x262xbf16, #tpu.memory_space<vmem>>, vector<1x1x1x256xbf16>
    %2 = vector.shape_cast %1 : vector<1x1x1x256xbf16> to vector<1x256xbf16>
    %c0_3 = arith.constant 0 : index
    %c0_4 = arith.constant 0 : index
    %c0_5 = arith.constant 0 : index
    %3 = vector.load %arg4[%c0_3, %c0_4, %c0_5] : memref<7x8x1xbf16, #tpu.memory_space<vmem>>, vector<1x8x1xbf16>
    %4 = vector.shape_cast %3 : vector<1x8x1xbf16> to vector<8x1xbf16>
    %5 = arith.extf %4 : vector<8x1xbf16> to vector<8x1xf32>
    %6 = arith.extf %2 : vector<1x256xbf16> to vector<1x256xf32>
    %7 = vector.broadcast %5 : vector<8x1xf32> to vector<8x256xf32>
    %8 = vector.broadcast %6 : vector<1x256xf32> to vector<8x256xf32>
    %9 = arith.mulf %7, %8 : vector<8x256xf32>
    %10 = arith.addf %0, %9 : vector<8x256xf32>
    %c0_6 = arith.constant 0 : index
    %c0_7 = arith.constant 0 : index
    %c0_8 = arith.constant 0 : index
    %c1 = arith.constant 1 : index
    %11 = vector.load %arg3[%c0_6, %c0_7, %c0_8, %c1] : memref<1x1x1x262xbf16, #tpu.memory_space<vmem>>, vector<1x1x1x256xbf16>
    %12 = vector.shape_cast %11 : vector<1x1x1x256xbf16> to vector<1x256xbf16>
    %c1_9 = arith.constant 1 : index
    %c0_10 = arith.constant 0 : index
    %c0_11 = arith.constant 0 : index
    %13 = vector.load %arg4[%c1_9, %c0_10, %c0_11] : memref<7x8x1xbf16, #tpu.memory_space<vmem>>, vector<1x8x1xbf16>
    %14 = vector.shape_cast %13 : vector<1x8x1xbf16> to vector<8x1xbf16>
    %15 = arith.extf %14 : vector<8x1xbf16> to vector<8x1xf32>
    %16 = arith.extf %12 : vector<1x256xbf16> to vector<1x256xf32>
    %17 = vector.broadcast %15 : vector<8x1xf32> to vector<8x256xf32>
    %18 = vector.broadcast %16 : vector<1x256xf32> to vector<8x256xf32>
    %19 = arith.mulf %17, %18 : vector<8x256xf32>
    %20 = arith.addf %10, %19 : vector<8x256xf32>
    %c0_12 = arith.constant 0 : index
    %c0_13 = arith.constant 0 : index
    %c0_14 = arith.constant 0 : index
    %c2 = arith.constant 2 : index
    %21 = vector.load %arg3[%c0_12, %c0_13, %c0_14, %c2] : memref<1x1x1x262xbf16, #tpu.memory_space<vmem>>, vector<1x1x1x256xbf16>
    %22 = vector.shape_cast %21 : vector<1x1x1x256xbf16> to vector<1x256xbf16>
    %c2_15 = arith.constant 2 : index
    %c0_16 = arith.constant 0 : index
    %c0_17 = arith.constant 0 : index
    %23 = vector.load %arg4[%c2_15, %c0_16, %c0_17] : memref<7x8x1xbf16, #tpu.memory_space<vmem>>, vector<1x8x1xbf16>
    %24 = vector.shape_cast %23 : vector<1x8x1xbf16> to vector<8x1xbf16>
    %25 = arith.extf %24 : vector<8x1xbf16> to vector<8x1xf32>
    %26 = arith.extf %22 : vector<1x256xbf16> to vector<1x256xf32>
    %27 = vector.broadcast %25 : vector<8x1xf32> to vector<8x256xf32>
    %28 = vector.broadcast %26 : vector<1x256xf32> to vector<8x256xf32>
    %29 = arith.mulf %27, %28 : vector<8x256xf32>
    %30 = arith.addf %20, %29 : vector<8x256xf32>
    %c0_18 = arith.constant 0 : index
    %c0_19 = arith.constant 0 : index
    %c0_20 = arith.constant 0 : index
    %c3 = arith.constant 3 : index
    %31 = vector.load %arg3[%c0_18, %c0_19, %c0_20, %c3] : memref<1x1x1x262xbf16, #tpu.memory_space<vmem>>, vector<1x1x1x256xbf16>
    %32 = vector.shape_cast %31 : vector<1x1x1x256xbf16> to vector<1x256xbf16>
    %c3_21 = arith.constant 3 : index
    %c0_22 = arith.constant 0 : index
    %c0_23 = arith.constant 0 : index
    %33 = vector.load %arg4[%c3_21, %c0_22, %c0_23] : memref<7x8x1xbf16, #tpu.memory_space<vmem>>, vector<1x8x1xbf16>
    %34 = vector.shape_cast %33 : vector<1x8x1xbf16> to vector<8x1xbf16>
    %35 = arith.extf %34 : vector<8x1xbf16> to vector<8x1xf32>
    %36 = arith.extf %32 : vector<1x256xbf16> to vector<1x256xf32>
    %37 = vector.broadcast %35 : vector<8x1xf32> to vector<8x256xf32>
    %38 = vector.broadcast %36 : vector<1x256xf32> to vector<8x256xf32>
    %39 = arith.mulf %37, %38 : vector<8x256xf32>
    %40 = arith.addf %30, %39 : vector<8x256xf32>
    %c0_24 = arith.constant 0 : index
    %c0_25 = arith.constant 0 : index
    %c0_26 = arith.constant 0 : index
    %c4 = arith.constant 4 : index
    %41 = vector.load %arg3[%c0_24, %c0_25, %c0_26, %c4] : memref<1x1x1x262xbf16, #tpu.memory_space<vmem>>, vector<1x1x1x256xbf16>
    %42 = vector.shape_cast %41 : vector<1x1x1x256xbf16> to vector<1x256xbf16>
    %c4_27 = arith.constant 4 : index
    %c0_28 = arith.constant 0 : index
    %c0_29 = arith.constant 0 : index
    %43 = vector.load %arg4[%c4_27, %c0_28, %c0_29] : memref<7x8x1xbf16, #tpu.memory_space<vmem>>, vector<1x8x1xbf16>
    %44 = vector.shape_cast %43 : vector<1x8x1xbf16> to vector<8x1xbf16>
    %45 = arith.extf %44 : vector<8x1xbf16> to vector<8x1xf32>
    %46 = arith.extf %42 : vector<1x256xbf16> to vector<1x256xf32>
    %47 = vector.broadcast %45 : vector<8x1xf32> to vector<8x256xf32>
    %48 = vector.broadcast %46 : vector<1x256xf32> to vector<8x256xf32>
    %49 = arith.mulf %47, %48 : vector<8x256xf32>
    %50 = arith.addf %40, %49 : vector<8x256xf32>
    %c0_30 = arith.constant 0 : index
    %c0_31 = arith.constant 0 : index
    %c0_32 = arith.constant 0 : index
    %c5 = arith.constant 5 : index
    %51 = vector.load %arg3[%c0_30, %c0_31, %c0_32, %c5] : memref<1x1x1x262xbf16, #tpu.memory_space<vmem>>, vector<1x1x1x256xbf16>
    %52 = vector.shape_cast %51 : vector<1x1x1x256xbf16> to vector<1x256xbf16>
    %c5_33 = arith.constant 5 : index
    %c0_34 = arith.constant 0 : index
    %c0_35 = arith.constant 0 : index
    %53 = vector.load %arg4[%c5_33, %c0_34, %c0_35] : memref<7x8x1xbf16, #tpu.memory_space<vmem>>, vector<1x8x1xbf16>
    %54 = vector.shape_cast %53 : vector<1x8x1xbf16> to vector<8x1xbf16>
    %55 = arith.extf %54 : vector<8x1xbf16> to vector<8x1xf32>
    %56 = arith.extf %52 : vector<1x256xbf16> to vector<1x256xf32>
    %57 = vector.broadcast %55 : vector<8x1xf32> to vector<8x256xf32>
    %58 = vector.broadcast %56 : vector<1x256xf32> to vector<8x256xf32>
    %59 = arith.mulf %57, %58 : vector<8x256xf32>
    %60 = arith.addf %50, %59 : vector<8x256xf32>
    %c0_36 = arith.constant 0 : index
    %c0_37 = arith.constant 0 : index
    %c0_38 = arith.constant 0 : index
    %c6 = arith.constant 6 : index
    %61 = vector.load %arg3[%c0_36, %c0_37, %c0_38, %c6] : memref<1x1x1x262xbf16, #tpu.memory_space<vmem>>, vector<1x1x1x256xbf16>
    %62 = vector.shape_cast %61 : vector<1x1x1x256xbf16> to vector<1x256xbf16>
    %c6_39 = arith.constant 6 : index
    %c0_40 = arith.constant 0 : index
    %c0_41 = arith.constant 0 : index
    %63 = vector.load %arg4[%c6_39, %c0_40, %c0_41] : memref<7x8x1xbf16, #tpu.memory_space<vmem>>, vector<1x8x1xbf16>
    %64 = vector.shape_cast %63 : vector<1x8x1xbf16> to vector<8x1xbf16>
    %65 = arith.extf %64 : vector<8x1xbf16> to vector<8x1xf32>
    %66 = arith.extf %62 : vector<1x256xbf16> to vector<1x256xf32>
    %67 = vector.broadcast %65 : vector<8x1xf32> to vector<8x256xf32>
    %68 = vector.broadcast %66 : vector<1x256xf32> to vector<8x256xf32>
    %69 = arith.mulf %67, %68 : vector<8x256xf32>
    %70 = arith.addf %60, %69 : vector<8x256xf32>
    %c0_42 = arith.constant 0 : index
    %c0_43 = arith.constant 0 : index
    %c0_44 = arith.constant 0 : index
    %71 = vector.load %arg5[%c0_42, %c0_43, %c0_44] : memref<1x8x1xf32, #tpu.memory_space<vmem>>, vector<1x8x1xf32>
    %72 = vector.shape_cast %71 : vector<1x8x1xf32> to vector<8x1xf32>
    %73 = vector.broadcast %72 : vector<8x1xf32> to vector<8x256xf32>
    %74 = arith.addf %70, %73 : vector<8x256xf32>
    %cst_45 = arith.constant 0.000000e+00 : f32
    %75 = vector.broadcast %cst_45 : f32 to vector<8x256xf32>
    %76 = arith.cmpf oge, %74, %75 : vector<8x256xf32>
    %cst_46 = arith.constant 2.000000e-01 : f32
    %77 = vector.broadcast %cst_46 : f32 to vector<8x256xf32>
    %78 = arith.mulf %74, %77 : vector<8x256xf32>
    %79 = arith.select %76, %74, %78 : vector<8x256xi1>, vector<8x256xf32>
    %c0_47 = arith.constant 0 : index
    %c0_48 = arith.constant 0 : index
    %c0_49 = arith.constant 0 : index
    %c0_50 = arith.constant 0 : index
    %80 = vector.load %arg6[%c0_47, %c0_48, %c0_49, %c0_50] : memref<1x1x8x256xf32, #tpu.memory_space<vmem>>, vector<1x1x8x256xf32>
    %81 = vector.shape_cast %80 : vector<1x1x8x256xf32> to vector<8x256xf32>
    %82 = vector.shape_cast %79 : vector<8x256xf32> to vector<1x1x8x256xf32>
    tpu.vector_store %arg6[%c0_47, %c0_48, %c0_49, %c0_50], %82 {strides = array<i32>} : memref<1x1x8x256xf32, #tpu.memory_space<vmem>>, vector<1x1x8x256xf32>,
    return
  }
  func.func @transform_0(%arg0: i32, %arg1: i32, %arg2: i32) -> (i32, i32, i32, i32) {
    %c0_i32 = arith.constant 0 : i32
    %c0_i32_0 = arith.constant 0 : i32
    %c0_i32_1 = arith.constant 0 : i32
    return %arg0, %arg1, %c0_i32, %c0_i32_0 : i32, i32, i32, i32
  }
  func.func @transform_1(%arg0: i32, %arg1: i32, %arg2: i32) -> (i32, i32, i32) {
    %c0_i32 = arith.constant 0 : i32
    %c0_i32_0 = arith.constant 0 : i32
    %c0_i32_1 = arith.constant 0 : i32
    return %arg1, %c0_i32, %c0_i32_0 : i32, i32, i32
  }
  func.func @transform_2(%arg0: i32, %arg1: i32, %arg2: i32) -> (i32, i32, i32) {
    %c0_i32 = arith.constant 0 : i32
    %c0_i32_0 = arith.constant 0 : i32
    %c0_i32_1 = arith.constant 0 : i32
    return %arg1, %c0_i32, %c0_i32_0 : i32, i32, i32
  }
  func.func @transform_3(%arg0: i32, %arg1: i32, %arg2: i32) -> (i32, i32, i32, i32) {
    %c0_i32 = arith.constant 0 : i32
    %c0_i32_0 = arith.constant 0 : i32
    return %arg0, %arg1, %c0_i32, %arg2 : i32, i32, i32, i32
  }
}

</mosaic_0001>

<bundles_post_ra>
// kernel: tpu_custom_call.1
= control target key start
LH: loop header
LB: loop body
LE: loop exit
PB: predicated region body
PF: predicated region fallthrough
CT: control target
= control target key end

     0   :  { %8 = vsyncpa [#allocation3], 0  ;;  %s958_s0 = inlined_call_operand.vmem [shape: bf16[2,1,1,262], index: 0, kind: input, shape index: {}]   ;;  %s959_s1 = inlined_call_operand.vmem [shape: bf16[7,8,1], index: 1, kind: input, shape index: {}]   ;;  %s960_s2 = inlined_call_operand.vmem [shape: f32[1,8,1], index: 2, kind: input, shape index: {}]   ;;  %s961_s3 = inlined_call_operand.hbm [shape: f32[2,1,8,256], index: 3, kind: output, shape index: {}]  }
   0x1   :  { %10 = vsyncpa [#allocation3 + $0x1], 0  ;;  %s806_s12 = smov 0   ;;  %s808_s13 = smov 0  }
   0x2   :  { %s810_s14 = smov 0   ;;  %s812_s15 = smov 0  }
   0x3   :  { %s814_s16 = smov 0   ;;  %s816_s17 = smov 0  }
   0x4 LB: > { %s613_s18 = sadd.s32 4294967295, %s776_s17   ;;  %s614_s19 = sadd.s32 4294967294, %s776_s17   ;;  %s776_s17 = sphi %s816_s17, %s16_s17   ;;  %s772_s16 = sphi %s814_s16, %s968_s16   ;;  %s768_s15 = sphi %s812_s15, %s967_s15   ;;  %s764_s14 = sphi %s810_s14, %s966_s14   ;;  %s760_s13 = sphi %s808_s13, %s965_s13   ;;  %s756_s12 = sphi %s806_s12, %s964_s12  }
   0x5   : > { %s35_s20 = sadd.s32 1, %s772_s16  ;;  %s126_s21 = sadd.s32 1, %s764_s14 }
   0x6   : > { %p37_p0 = scmp.ge.s32.totalorder %s35_s20, 2  ;;  %p136_p1 = scmp.ne.s32.totalorder %s764_s14, %s760_s13 }
   0x7   : > { %p137_p2 = scmp.eq.s32.totalorder %s613_s18, 1  ;;  %p142_p3 = scmp.ne.s32.totalorder %s760_s13, %s756_s12 }
   0x8   : > { %s970_s20 = smov (%p37_p0, %s35_s20), 0  ;;  %p143_p5 = scmp.eq.s32.totalorder %s614_s19, 1 }
   0x9   : > { %p846_p4 = por %p137_p2, %p136_p1  ;;  %s119_s23 = ssub.s32 %s772_s16, %s970_s20 }
   0xa   : > { %p619_p6 = scmp.ge.s32.totalorder %s776_s17, 1  ;;  %p124_p7 = scmp.eq.s32.totalorder %s119_s23, 0 }
   0xb   : > { %p853_p8 = por %p143_p5, %p142_p3  ;;  %p188_p9 = scmp.lt.s32.totalorder %s776_s17, 3 }
   0xc   : > { %s859_s25 = scalar_select %p124_p7, %s764_s14, %s126_s21  }
   0xd   : > { %p189_p10 = pnand %p619_p6, %p188_p9 }
   0xe   : > { %v623_v0 = vld [vmem:[%s959_s1 + $0xc] sm:$0xff] (!%p189_p10)   ;;  %v621_v1 = vld [vmem:[%s959_s1 + $0x4] sm:$0xff] (!%p189_p10)   ;;  %p224_p11 = scmp.lt.s32.totalorder (!%p189_p10), %s768_s15, 1  ;;  %v778_v2 = vmov (!%p189_p10), 0   ;;  %v253_v5 = vlaneseq (!%p189_p10)  ;;  %v626_v8 = vld [vmem:[%s959_s1 + $0x14] sm:$0xff] (!%p189_p10)   ;;  %s779_s21 = smov (!%p189_p10), 127  }
   0xf   : > { %192 = sbr.rel (%p189_p10) target bundleno = 316 (0x13c), region = 32  ;;  %697 = vset.pattern.permute.xlu1 (!%p189_p10), %v778_v2  ;;  %696 = vset.pattern.permute.xlu0 (!%p189_p10), %v778_v2  ;;  %v361_v3 = vunpack.c.l.bf16 (!%p189_p10), %v623_v0  ;;  %v278_v4 = vunpack.c.l.bf16 (!%p189_p10), %v621_v1  ;;  %v388_v6 = vunpack.c.h.bf16 (!%p189_p10), %v623_v0  ;;  %v334_v7 = vunpack.c.h.bf16 (!%p189_p10), %v621_v1  ;;  %v244_v12 = vld [vmem:[%s959_s1] sm:$0xf] (!%p189_p10)  ;;  %s780_s23 = smov (!%p189_p10), 126  }
  0x10   : > { %v254_v9 = vshrl.u32 (!%p189_p10), %v253_v5, 7  ;;  %v442_v10 = vunpack.c.h.bf16 (!%p189_p10), %v626_v8  ;;  %v415_v11 = vunpack.c.l.bf16 (!%p189_p10), %v626_v8  ;;  %v245_v16 = vunpack.c.l.bf16 (!%p189_p10), %v244_v12  ;;  %v467_v18 = vld [vmem:[%s960_s2] sm:$0xff] (!%p189_p10)  ;;  %s781_s26 = smov (!%p189_p10), 125   ;;  %s782_s27 = smov (!%p189_p10), 124  }
  0x11   : > { %364 = vperm.xlu1 (!%p189_p10), %697, %v361_v3   ;;  %282 = vperm.xlu0 (!%p189_p10), %696, %v278_v4   ;;  %s783_s28 = smov (!%p189_p10), 123   ;;  %s784_s29 = smov (!%p189_p10), 122   ;;  %vm325_vm0 = vcmask (!%p189_p10), 1039360   ;;  %vm352_vm1 = vcmask (!%p189_p10), 1031168   ;;  %vm379_vm2 = vcmask (!%p189_p10), 1022976   ;;  %vm406_vm3 = vcmask (!%p189_p10), 1014784  }
  0x12   : > { %v878_v14 = vsub.s32 (!%p189_p10), 0, %v254_v9  ;;  %v259_v17 = vsub.s32 (!%p189_p10), 2, %v254_v9  ;;  %v296_v25 = vsub.s32 (!%p189_p10), 4, %v254_v9  ;;  %vm433_vm4 = vcmask (!%p189_p10), 1006592   ;;  %s632_s5 = sshll.u32 (!%p189_p10), %s768_s15, 8  ;;  %s785_s18 = smov (!%p189_p10), [#allocation2]  }
  0x13   : > { %vm460_vm5 = vcmask (!%p189_p10), 998400   ;;  %s909_s10 = scalar_lea.hbm (!%p189_p10), %s961_s3, %s632_s5  ;;  %s702_s19 = sshll.u32 (!%p189_p10), %s785_s18, 4  ;;  %s703_s19 = int_to_ptr.vmem [resolvable:$false] %s702_s19 }
  0x15   : > { %391 = vperm.xlu1 (!%p189_p10), %697, %v388_v6   ;;  %337 = vperm.xlu0 (!%p189_p10), %696, %v334_v7  }
  0x16   : > { %s225_s30 = scalar_select %p224_p11, %s768_s15, 1 }
  0x18   : > { %s633_s6 = smul.u32 3, %s225_s30  ;;  %s221_s30 = sand.u32 1, %s760_s13  }
  0x19   : > { %445 = vperm.xlu1 %697, %v442_v10   ;;  %418 = vperm.xlu0 %696, %v415_v11   ;;  %s620_s4 = sshll.u32 %s221_s30, 4  ;;  %s484_s15 = scalar_lea.sflag [#allocation3], %s221_s30 }
  0x1a   : > { %s231_s11 = scalar_lea.vmem %s958_s0, %s633_s6  ;;  %s223_s6 = scalar_lea.vmem [#allocation2], %s620_s4 }
  0x1b   : > { %v243_v13 = vld [vmem:[%s231_s11] sm:$0x3]  ;;  %s502_s7 = sshll.u32 %s223_s6, 4  ;;  %s911_s7 = int_to_ptr.vmem [resolvable:$true] %s502_s7 }
  0x1c   : > { %v246_v15 = vunpack.c.l.bf16 %v243_v13  ;;  %v275_v23 = vld [vmem:[%s231_s11] sm:$0x7]  ;;  %s698_s11 = scalar_lea.vmem %s911_s7, 256  ;;  %p705_p1 = scmp.lt.s32.totalorder %s911_s7, %s703_s19 }
  0x1d   : > { %470 = vperm.xlu1 %697, %v467_v18   ;;  %249 = vperm.xlu0 %696, %v245_v16   ;;  %v279_v24 = vunpack.c.l.bf16 %v275_v23  ;;  %p699_p12 = scmp.ne.s32.totalorder %s911_s7, %s698_s11 }
  0x1e   : > { %v884_v19 = vrot.slane %v246_v15, %v878_v14  ;;  %v886_v20 = vrot.slane %v246_v15, %v259_v17 }
  0x1f   : > { %v289_v26 = vrot.slane %v279_v24, %v878_v14  ;;  %v293_v27 = vrot.slane %v279_v24, %v259_v17  ;;  %v297_v28 = vrot.slane %v279_v24, %v296_v25  ;;  %p700_p13 = pnand %p699_p12, %p846_p4 }
  0x20   : > { %v266_v21 = vrot.slane %v884_v19, %v878_v14  ;;  %v270_v22 = vrot.slane %v886_v20, %v878_v14 }
  0x21   : > { %v304_v29 = vrot.slane %v289_v26, %v878_v14  ;;  %v308_v30 = vrot.slane %v293_v27, %v878_v14  ;;  %v312_v32 = vrot.slane %v297_v28, %v878_v14  ;;  %p701_p0 = pneg %p700_p13 }
  0x90   : > { %v283_v31 = vpop.permute.xlu0 %282  ;;  %v365_v39 = vpop.permute.xlu1 %364 }
  0x91   : > { %v313_v33 = vmul.f32 %v304_v29, %v283_v31  ;;  %v314_v34 = vmul.f32 %v308_v30, %v283_v31  ;;  %v315_v36 = vmul.f32 %v312_v32, %v283_v31  ;;  %v367_v41 = vmul.f32 %v365_v39, %v304_v29 }
  0x92   : > { %v368_v42 = vmul.f32 %v365_v39, %v308_v30  ;;  %v369_v43 = vmul.f32 %v365_v39, %v312_v32 }
  0x93   : > { %319 = vrot.lane.b32.xlu1 %v313_v33, %s779_s21  ;;  %321 = vrot.lane.b32.xlu0 %v314_v34, %s779_s21 }
  0x94   : > { %v338_v35 = vpop.permute.xlu0 %337  ;;  %v392_v44 = vpop.permute.xlu1 %391 }
  0x95   : > { %v340_v37 = vmul.f32 %v338_v35, %v304_v29  ;;  %v341_v38 = vmul.f32 %v338_v35, %v308_v30  ;;  %v342_v40 = vmul.f32 %v338_v35, %v312_v32  ;;  %v394_v45 = vmul.f32 %v392_v44, %v304_v29 }
  0x96   : > { %v395_v46 = vmul.f32 %v392_v44, %v308_v30  ;;  %v396_v47 = vmul.f32 %v392_v44, %v312_v32 }
  0x97   : > { %323 = vrot.lane.b32.xlu1 %v315_v36, %s779_s21  ;;  %346 = vrot.lane.b32.xlu0 %v340_v37, %s780_s23  ;;  %s704_s21 = scalar_lea.vmem %s703_s19, 512 }
  0x98   : > { %v419_v48 = vpop.permute.xlu0 %418  ;;  %v446_v51 = vpop.permute.xlu1 %445  ;;  %p706_p2 = scmp.lt.s32.totalorder %s704_s21, %s698_s11 }
  0x99   : > { %v422_v49 = vmul.f32 %v419_v48, %v308_v30  ;;  %v421_v50 = vmul.f32 %v419_v48, %v304_v29  ;;  %v448_v52 = vmul.f32 %v446_v51, %v304_v29  ;;  %v423_v53 = vmul.f32 %v419_v48, %v312_v32 }
  0x9a   : > { %v450_v54 = vmul.f32 %v446_v51, %v312_v32  ;;  %v449_v55 = vmul.f32 %v446_v51, %v308_v30  ;;  %p707_p3 = por %p706_p2, %p705_p1 }
  0x9b   : > { %348 = vrot.lane.b32.xlu1 %v341_v38, %s780_s23  ;;  %350 = vrot.lane.b32.xlu0 %v342_v40, %s780_s23 }
  0x9c   : > { %v471_v56 = vpop.permute.xlu1 %470  ;;  %v250_v57 = vpop.permute.xlu0 %249  ;;  %p708_p5 = pnand %p707_p3, %p701_p0 }
  0x9d   : > { %v271_v8 = vmul.f32 %v266_v21, %v250_v57  ;;  %v272_v9 = vmul.f32 %v270_v22, %v250_v57 }
  0x9f   : > { %373 = vrot.lane.b32.xlu1 %v367_v41, %s781_s26  ;;  %375 = vrot.lane.b32.xlu0 %v368_v42, %s781_s26 }
  0xa3   : > { %377 = vrot.lane.b32.xlu1 %v369_v43, %s781_s26  ;;  %400 = vrot.lane.b32.xlu0 %v394_v45, %s782_s27 }
  0xa7   : > { %402 = vrot.lane.b32.xlu1 %v395_v46, %s782_s27  ;;  %404 = vrot.lane.b32.xlu0 %v396_v47, %s782_s27 }
  0xab   : > { %429 = vrot.lane.b32.xlu1 %v422_v49, %s783_s28  ;;  %427 = vrot.lane.b32.xlu0 %v421_v50, %s783_s28 }
  0xaf   : > { %454 = vrot.lane.b32.xlu1 %v448_v52, %s784_s29  ;;  %431 = vrot.lane.b32.xlu0 %v423_v53, %s783_s28 }
  0xb3   : > { %458 = vrot.lane.b32.xlu1 %v450_v54, %s784_s29  ;;  %456 = vrot.lane.b32.xlu0 %v449_v55, %s784_s29 }
 0x105   : > { %v320_v58 = vpop.permute.xlu1 %319  ;;  %v322_v59 = vpop.permute.xlu0 %321 }
 0x106   : > { %v326_v6 = vsel %vm325_vm0, %v320_v58, %v322_v59 }
 0x107   : > { %v330_v13 = vadd.f32 %v326_v6, %v271_v8 }
 0x109   : > { %v324_v60 = vpop.permute.xlu1 %323  ;;  %v347_v61 = vpop.permute.xlu0 %346 }
 0x10a   : > { %v327_v7 = vsel %vm325_vm0, %v322_v59, %v324_v60 }
 0x10b   : > { %v331_v15 = vadd.f32 %v327_v7, %v272_v9 }
 0x10d   : > { %v349_v62 = vpop.permute.xlu1 %348  ;;  %v351_v63 = vpop.permute.xlu0 %350 }
 0x10e   : > { %v353_v10 = vsel %vm352_vm1, %v347_v61, %v349_v62  ;;  %v354_v11 = vsel %vm352_vm1, %v349_v62, %v351_v63 }
 0x10f   : > { %v357_v23 = vadd.f32 %v353_v10, %v330_v13  ;;  %v358_v24 = vadd.f32 %v354_v11, %v331_v15 }
 0x111   : > { %v374_v0 = vpop.permute.xlu1 %373  ;;  %v376_v1 = vpop.permute.xlu0 %375 }
 0x112   : > { %v380_v17 = vsel %vm379_vm2, %v374_v0, %v376_v1 }
 0x113   : > { %v384_v14 = vadd.f32 %v380_v17, %v357_v23 }
 0x115   : > { %v378_v2 = vpop.permute.xlu1 %377  ;;  %v401_v3 = vpop.permute.xlu0 %400 }
 0x116   : > { %v381_v18 = vsel %vm379_vm2, %v376_v1, %v378_v2 }
 0x117   : > { %v385_v20 = vadd.f32 %v381_v18, %v358_v24 }
 0x119   : > { %v403_v4 = vpop.permute.xlu1 %402  ;;  %v405_v5 = vpop.permute.xlu0 %404 }
 0x11a   : > { %v407_v19 = vsel %vm406_vm3, %v401_v3, %v403_v4  ;;  %v408_v21 = vsel %vm406_vm3, %v403_v4, %v405_v5 }
 0x11b   : > { %v411_v28 = vadd.f32 %v407_v19, %v384_v14  ;;  %v412_v29 = vadd.f32 %v408_v21, %v385_v20 }
 0x11d   : > { %v430_v12 = vpop.permute.xlu1 %429  ;;  %v428_v16 = vpop.permute.xlu0 %427 }
 0x11e   : > { %v434_v26 = vsel %vm433_vm4, %v428_v16, %v430_v12 }
 0x11f   : > { %v438_v31 = vadd.f32 %v434_v26, %v411_v28 }
 0x121   : > { %v455_v25 = vpop.permute.xlu1 %454  ;;  %v432_v22 = vpop.permute.xlu0 %431 }
 0x122   : > { %v435_v27 = vsel %vm433_vm4, %v430_v12, %v432_v22 }
 0x123   : > { %v439_v32 = vadd.f32 %v435_v27, %v412_v29 }
 0x125   : > { %v459_v30 = vpop.permute.xlu1 %458  ;;  %v457_v33 = vpop.permute.xlu0 %456 }
 0x126   : > { %v461_v34 = vsel %vm460_vm5, %v455_v25, %v457_v33  ;;  %v462_v35 = vsel %vm460_vm5, %v457_v33, %v459_v30 }
 0x127   : > { %v465_v36 = vadd.f32 %v461_v34, %v438_v31  ;;  %v466_v37 = vadd.f32 %v462_v35, %v439_v32 }
 0x129   : > { %v473_v38 = vadd.f32 %v471_v56, %v465_v36  ;;  %v474_v39 = vadd.f32 %v471_v56, %v466_v37 }
 0x12b   : > { %v477_v40 = vmul.f32 0.2, %v473_v38  ;;  %v478_v41 = vmul.f32 0.2, %v474_v39  ;;  %vm475_vm6 = vcmp.ge.f32.partialorder %v473_v38, 0.0  ;;  %vm476_vm7 = vcmp.ge.f32.partialorder %v474_v39, 0.0 }
 0x12d   : > { %v479_v42 = vsel %vm475_vm6, %v473_v38, %v477_v40  ;;  %v480_v43 = vsel %vm476_vm7, %v474_v39, %v478_v41 }
 0x12e   : > { %481 = vst [vmem:[%s223_s6] sm:$0xff] %v479_v42  ;;  %482 = vst [vmem:[%s223_s6 + $0x8] sm:$0xff] %v480_v43 }
 0x12f   : > { %711 = shalt.err (!%p708_p5)
}
 0x130   : > { %s712_s23 = scalar_lea.hbm %s909_s10, 256  ;;  %s716_s28 = scalar_lea.hbm %s961_s3, 512 }
 0x131   : > { %p713_p6 = scmp.ne.s32.totalorder %s909_s10, %s712_s23  ;;  %p717_p10 = scmp.lt.u32.totalorder %s909_s10, %s961_s3 }
 0x132   : > { %p718_p11 = scmp.lt.u32.totalorder %s716_s28, %s712_s23  ;;  %p720_p13 = scmp.lt.u32.totalorder %s712_s23, %s909_s10 }
 0x133   : > { %p714_p7 = pnand %p713_p6, %p846_p4 }
 0x134   : > { %p719_p12 = por %p718_p11, %p717_p10 }
 0x135   : > { %p715_p9 = pneg %p714_p7 }
 0x136   : > { %p721_p0 = por %p720_p13, %p719_p12 }
 0x138   : > { %p722_p1 = pnand %p721_p0, %p715_p9 }
 0x13a   : > { %725 = shalt.err (!%p722_p1)
}
 0x13b   : > { %634 = dma.vmem_to_hbm [thread:$0]  (%p846_p4), %s911_s7, 256, %s909_s10, %s484_s15  }
 0x13c PF: > { %p640_p2 = scmp.ge.s32.totalorder %s776_s17, 2  ;;  %s514_s4 = sand.u32 1, %s756_s12  }
 0x13d   : > { %s515_s5 = scalar_lea.sflag [#allocation3], %s514_s4 }
 0x13e   : > { %p637_p3 = pnand %p640_p2, %p853_p8 }
 0x140   : > { %751 = dma.done.wait (!%p637_p3), %s515_s5, 256  }
 0x141   : > { %753 = vsyncadd (!%p637_p3), %s515_s5, 4294967040  ;;  %s16_s17 = sadd.s32 1, %s776_s17   ;;  %s964_s12 = smov %s760_s13 }
 0x142   : > { %p13_p5 = scmp.ge.s32.totalorder %s16_s17, 4   ;;  %s965_s13 = smov %s764_s14 }
 0x143   : > { %s966_s14 = smov %s859_s25  ;;  %s967_s15 = smov %s772_s16 }
 0x144   : > { %s968_s16 = smov %s970_s20  ;;  %15 = sbr.rel (!%p13_p5) target bundleno = 4 (0x4), region = 79 }
 0x14b   :  { %520 = vsyncpa [#allocation3], 1 }
 0x14c   :  { %522 = vsyncpa [#allocation3 + $0x1], 1 }

</bundles_post_ra>
